<compile_context>
chip_gen: v7x
topology: tpu7x:2x2x1
jax: 0.10.0
libtpu: 0.0.40
codegen_flags: <defaults>
</compile_context>

<pallas_src>
import jax
import jax.numpy as jnp
from jax.experimental import pallas as pl
from jax.experimental.pallas import tpu as pltpu


LANES = 512              # lane (minor) width of the dense slabs
TILE_R_MAX = 1024        # max sublane rows / grid step -> <=12 MiB double-buffered VMEM
PALLAS_MIN_BATCH = 8192  # below this, a fused XLA affine beats kernel-launch cost


def _round_up(a, m):
    return (a + m - 1) // m * m


def _affine_kernel(params_ref, x_ref, o_ref):
    # params_ref: SMEM (3,) f32 = [W[0,0], W[1,0], b]   (scalar path)
    # x_ref:      VMEM (2, tile_r, LANES)  feature-major dense slab tile
    # o_ref:      VMEM (tile_r, LANES)     dense output slab tile (unmasked vst)
    w0 = params_ref[0]
    w1 = params_ref[1]
    b = params_ref[2]
    # Pure VPU: two fmuls + two adds per lane, no MXU involvement.
    o_ref[...] = x_ref[0] * w0 + x_ref[1] * w1 + b


def _affine_slab(x_slab, params, *, tile_r):
    """x_slab: (2, R, LANES) f32 feature-major slabs -> (R, LANES) f32 output."""
    _, r, lanes = x_slab.shape
    n_elems = r * lanes
    return pl.pallas_call(
        _affine_kernel,
        out_shape=jax.ShapeDtypeStruct((r, lanes), jnp.float32),
        grid=(pl.cdiv(r, tile_r),),
        in_specs=[
            pl.BlockSpec(memory_space=pltpu.MemorySpace.SMEM),       # collapsed params
            pl.BlockSpec((2, tile_r, lanes), lambda i: (0, i, 0)),   # x slab tile
        ],
        out_specs=pl.BlockSpec((tile_r, lanes), lambda i: (i, 0)),   # y slab tile
        compiler_params=pltpu.CompilerParams(
            dimension_semantics=("parallel",),        # shards steps over v7x's 2 TCs
            vmem_limit_bytes=32 * 1024 * 1024,        # covers v5e 16 MiB default, < v7x 64 MiB
        ),
        cost_estimate=pl.CostEstimate(                # purely HBM-bandwidth-bound
            flops=4 * n_elems,
            transcendentals=0,
            bytes_accessed=12 * n_elems + 12,
        ),
    )(params, x_slab)


def circle_model_v1(x, w1, b1, w2, b2, w3, b3):
    """Forward pass of CircleModelV1.  x: (N, 2) f32 -> (N, 1) f32.

    Weights are stored (in_features, out_features), i.e. transposed vs PyTorch,
    so x @ W + b is identical to PyTorch's x @ W_pt.T + b.
    """
    n = x.shape[0]
    x = x.astype(jnp.float32)

    # Collapse the activation-free 3-layer MLP into one affine map (once, in XLA).
    w = w1 @ w2 @ w3                                  # (2, 1)
    b = (b1 @ w2 + b2) @ w3 + b3                      # (1, 1)

    if n < PALLAS_MIN_BATCH:
        # Small-batch fast path: the transpose/pad + kernel launch would dominate.
        return (x @ w + b).astype(jnp.float32)

    params = jnp.stack([w[0, 0], w[1, 0], b[0, 0]]).astype(jnp.float32)  # (3,)

    # PyTorch layout (N, 2) -> feature-major dense slabs (2, R, LANES).
    # Pad only to the next LANES multiple (<= 511 rows); the pad+transpose fuses
    # into one pass and is the only wrapper-side data movement.
    npad = _round_up(n, LANES)
    r = npad // LANES
    x_slab = jnp.pad(x, ((0, npad - n), (0, 0))).T.reshape(2, r, LANES)

    # Tile as large as the VMEM budget allows, but keep >= 2 grid steps whenever
    # the batch allows so the "parallel" axis actually uses both v7x TensorCores.
    if r <= 8:
        tile_r = r                                        # full-extent (tiny) slab
    else:
        tile_r = min(TILE_R_MAX, _round_up(pl.cdiv(r, 2), 8))

    y_slab = _affine_slab(x_slab, params, tile_r=tile_r)  # (R, LANES)

    # Back to the PyTorch (N, 1) convention.  The slice also drops any padded
    # rows and the garbage lanes of the cdiv-masked tail block (keep it!).
    return y_slab.reshape(npad)[:n].reshape(n, 1)


def init_params(key):
    """Deterministic init mimicking PyTorch nn.Linear default (uniform +/- 1/sqrt(fan_in))."""
    def linear(key, fan_in, fan_out):
        kw, kb = jax.random.split(key)
        bound = 1.0 / jnp.sqrt(fan_in)
        # stored as (in, out) so forward is x @ W + b
        w = jax.random.uniform(kw, (fan_in, fan_out), jnp.float32, -bound, bound)
        b = jax.random.uniform(kb, (1, fan_out), jnp.float32, -bound, bound)
        return w, b

    k1, k2, k3 = jax.random.split(key, 3)
    w1, b1 = linear(k1, 2, 10)
    w2, b2 = linear(k2, 10, 10)
    w3, b3 = linear(k3, 10, 1)
    return w1, b1, w2, b2, w3, b3


if __name__ == "__main__":
    key = jax.random.PRNGKey(0)
    k_x1, k_x2, k_p = jax.random.split(key, 3)
    w1, b1, w2, b2, w3, b3 = init_params(k_p)

    def ref_forward(xv):
        # Pure-JAX reference of the ORIGINAL (non-collapsed) 3-layer forward.
        return ((xv @ w1 + b1) @ w2 + b2) @ w3 + b3

    # 1) Small batch -> fused-XLA fast path (no kernel launch).
    x_small = jax.random.normal(k_x1, (8, 2), jnp.float32)
    out_small = jax.block_until_ready(circle_model_v1(x_small, w1, b1, w2, b2, w3, b3))
    assert out_small.shape == (8, 1)
    assert jnp.allclose(out_small, ref_forward(x_small), atol=1e-5, rtol=1e-4)

    # 2) Larger batch -> Pallas kernel path: 2 parallel grid steps, dense slabs,
    #    ragged tail (20000 -> padded to 20480 rows, cdiv-masked last block).
    n_big = 20000
    x_big = jax.random.normal(k_x2, (n_big, 2), jnp.float32)
    out_big = jax.block_until_ready(circle_model_v1(x_big, w1, b1, w2, b2, w3, b3))
    assert out_big.shape == (n_big, 1)
    assert jnp.allclose(out_big, ref_forward(x_big), atol=1e-5, rtol=1e-4)

    print("KERNEL_OK")
</pallas_src>

<mosaic_0001>
module attributes {stable_mosaic.version = 11 : i64} {
  func.func @_affine_kernel(%arg0: i32, %arg1: memref<3xf32, #tpu.memory_space<smem>>, %arg2: memref<2x24x512xf32, #tpu.memory_space<vmem>>, %arg3: memref<24x512xf32, #tpu.memory_space<vmem>>) attributes {dimension_semantics = [#tpu.dimension_semantics<parallel>], iteration_bounds = array<i64: 2>, scalar_prefetch = 0 : i64, scratch_operands = 0 : i64, tpu.core_type = #tpu.core_type<tc>, window_params = [{transform_indices = @transform_0, window_bounds = array<i64: 3>}, {transform_indices = @transform_1, window_bounds = array<i64: 2, 24, 512>}, {transform_indices = @transform_2, window_bounds = array<i64: 24, 512>}]} {
    %c0 = arith.constant 0 : index
    %0 = memref.load %arg1[%c0] : memref<3xf32, #tpu.memory_space<smem>>
    %c1 = arith.constant 1 : index
    %1 = memref.load %arg1[%c1] : memref<3xf32, #tpu.memory_space<smem>>
    %c2 = arith.constant 2 : index
    %2 = memref.load %arg1[%c2] : memref<3xf32, #tpu.memory_space<smem>>
    %c0_0 = arith.constant 0 : index
    %c0_1 = arith.constant 0 : index
    %c0_2 = arith.constant 0 : index
    %3 = vector.load %arg2[%c0_0, %c0_1, %c0_2] : memref<2x24x512xf32, #tpu.memory_space<vmem>>, vector<1x24x512xf32>
    %4 = vector.shape_cast %3 : vector<1x24x512xf32> to vector<24x512xf32>
    %5 = vector.broadcast %0 : f32 to vector<24x512xf32>
    %6 = arith.mulf %4, %5 : vector<24x512xf32>
    %c1_3 = arith.constant 1 : index
    %c0_4 = arith.constant 0 : index
    %c0_5 = arith.constant 0 : index
    %7 = vector.load %arg2[%c1_3, %c0_4, %c0_5] : memref<2x24x512xf32, #tpu.memory_space<vmem>>, vector<1x24x512xf32>
    %8 = vector.shape_cast %7 : vector<1x24x512xf32> to vector<24x512xf32>
    %9 = vector.broadcast %1 : f32 to vector<24x512xf32>
    %10 = arith.mulf %8, %9 : vector<24x512xf32>
    %11 = arith.addf %6, %10 : vector<24x512xf32>
    %12 = vector.broadcast %2 : f32 to vector<24x512xf32>
    %13 = arith.addf %11, %12 : vector<24x512xf32>
    %c0_6 = arith.constant 0 : index
    %c0_7 = arith.constant 0 : index
    %14 = vector.load %arg3[%c0_6, %c0_7] : memref<24x512xf32, #tpu.memory_space<vmem>>, vector<24x512xf32>
    tpu.vector_store %arg3[%c0_6, %c0_7], %13 {strides = array<i32>} : memref<24x512xf32, #tpu.memory_space<vmem>>, vector<24x512xf32>,
    return
  }
  func.func @transform_0(%arg0: i32) -> i32 {
    %c0_i32 = arith.constant 0 : i32
    %c0_i32_0 = arith.constant 0 : i32
    return %c0_i32 : i32
  }
  func.func @transform_1(%arg0: i32) -> (i32, i32, i32) {
    %c0_i32 = arith.constant 0 : i32
    %c0_i32_0 = arith.constant 0 : i32
    %c0_i32_1 = arith.constant 0 : i32
    return %c0_i32, %arg0, %c0_i32_0 : i32, i32, i32
  }
  func.func @transform_2(%arg0: i32) -> (i32, i32) {
    %c0_i32 = arith.constant 0 : i32
    %c0_i32_0 = arith.constant 0 : i32
    return %arg0, %c0_i32 : i32, i32
  }
}

</mosaic_0001>

<bundles_post_ra>
// kernel: tpu_custom_call.1
= control target key start
LH: loop header
LB: loop body
LE: loop exit
PB: predicated region body
PF: predicated region fallthrough
CT: control target
= control target key end

     0   :  { %7 = vsyncpa [#allocation5], 0  ;;  %s877_s0 = inlined_call_operand.hbm [shape: f32[3], index: 0, kind: input, shape index: {}]   ;;  %s878_s1 = inlined_call_operand.hbm [shape: f32[2,40,512], index: 1, kind: input, shape index: {}]   ;;  %s879_s2 = inlined_call_operand.hbm [shape: f32[40,512], index: 2, kind: output, shape index: {}]  }
   0x1   :  { %8 = vsyncpa [#allocation3], 0 }
   0x2   :  { %10 = vsyncpa [#allocation3 + $0x1], 0 }
   0x3   :  { %11 = vsyncpa [#allocation4], 0 }
   0x4   :  { %13 = vsyncpa [#allocation4 + $0x1], 0  ;;  %s636_s9 = smov 0   ;;  %s638_s10 = smov 0  }
   0x5   :  { %s640_s11 = smov 0   ;;  %s642_s12 = smov 0  }
   0x6 LB: > { %s657_s13 = sadd.s32 4294967295, %s610_s12   ;;  %s418_s14 = sadd.s32 4294967294, %s610_s12   ;;  %s610_s12 = sphi %s642_s12, %s888_s12   ;;  %s606_s11 = sphi %s640_s11, %s887_s11   ;;  %s602_s10 = sphi %s638_s10, %s886_s10   ;;  %s598_s9 = sphi %s636_s9, %s885_s9  }
   0x7   : > { %s661_s15 = sadd.s32 1, %s610_s12   ;;  %s47_s16 = sadd.s32 1, %s606_s11 }
   0x8   : > { %s44_s17 = ssub.s32 %s610_s12, %s661_s15  ;;  %p54_p0 = scmp.ne.s32.totalorder %s606_s11, %s602_s10 }
   0x9   : > { %p45_p1 = scmp.eq.s32.totalorder %s44_s17, 0  ;;  %p55_p2 = scmp.eq.s32.totalorder %s610_s12, 0 }
   0xa   : > { %p60_p3 = scmp.ne.s32.totalorder %s602_s10, %s598_s9  ;;  %p61_p4 = scmp.eq.s32.totalorder %s657_s13, 0 }
   0xb   : > { %s673_s18 = scalar_select %p45_p1, %s606_s11, %s47_s16  }
   0xc   : > { %p675_p5 = por %p55_p2, %p54_p0  ;;  %p681_p6 = por %p61_p4, %p60_p3 }
   0xd   : > { %p84_p7 = scmp.eq.s32.totalorder %s657_s13, 1  ;;  %p90_p8 = scmp.eq.s32.totalorder %s418_s14, 1 }
   0xe   : > { %p419_p9 = scmp.ge.s32.totalorder %s610_s12, 1  ;;  %p97_p10 = scmp.lt.s32.totalorder %s610_s12, 3 }
   0xf   : > { %p688_p11 = por %p84_p7, %p54_p0  ;;  %p692_p12 = por %p90_p8, %p60_p3 }
  0x10   : > { %p696_p13 = pnand %p419_p9, %p97_p10  ;;  %s527_s26 = scalar_lea.hbm %s877_s0, 16 }
  0x11   : > { %p528_p0 = scmp.ne.s32.totalorder %s877_s0, %s527_s26  ;;  %p534_p9 = scmp.lt.u32.totalorder %s527_s26, %s877_s0 }
  0x12   : > { %p476_p1 = pneg %p696_p13 }
  0x14   : > { %p477_p2 = pnand %p476_p1, %p61_p4 }
  0x16   : > { %p529_p3 = pneg %p477_p2 }
  0x18   : > { %p530_p7 = pnand %p529_p3, %p528_p0 }
  0x1a   : > { %p531_p8 = pneg %p530_p7 }
  0x1c   : > { %p536_p10 = pnand %p534_p9, %p531_p8 }
  0x1e   : > { %539 = shalt.err (!%p536_p10)
}
  0x1f   : > { %s612_s3 = smov [#allocation2]   ;;  %p421_p1 = scmp.ge.s32.totalorder %s610_s12, 2 }
  0x20   : > { %479 = dma.hbm_to_smem (!%p477_p2), %s877_s0, 16, %s612_s3, [#allocation5]  }
  0x21   : > { %115 = sbr.rel (%p421_p1) target bundleno = 65 (0x41), region = 20 }
  0x28   : > { %118 = sbr.rel (!%p675_p5) target bundleno = 65 (0x41), region = 24 }
  0x2f   : > { %s119_s6 = sand.u32 1, %s606_s11   ;;  %s124_s7 = smul.u32 3, %s610_s12 }
  0x30   : > { %s467_s8 = smul.u32 192, %s119_s6  ;;  %s120_s24 = scalar_lea.sflag [#allocation3], %s119_s6 }
  0x31   : > { %s125_s14 = ssub.s32 5, %s124_s7 }
  0x32   : > { %p126_p0 = scmp.lt.s32.totalorder %s125_s14, 3  ;;  %s123_s25 = scalar_lea.vmem [#allocation6], %s467_s8 }
  0x34   : > { %s890_s14 = smov (!%p126_p0, %s125_s14), 3 }
  0x35   : > { %s457_s16 = sshll.u32 %s890_s14, 10 }
  0x36   : > { %s131_s17 = ssub.s32 3072, %s457_s16 }
  0x37   : > { %132 = vsyncadd %s120_s24, %s131_s17  ;;  %p424_p2 = scmp.ne.s32.totalorder %s457_s16, 0  ;;  %s465_s26 = smul.u32 1536, %s610_s12 }
  0x38   : > { %s143_s27 = sld [smem:[#allocation0]]   ;;  %s151_s28 = sshll.u32 %s123_s25, 4  ;;  %s152_s28 = int_to_ptr.vmem [resolvable:$true] %s151_s28 }
  0x39   : > { %s136_s30 = scalar_lea.hbm %s878_s1, %s465_s26  ;;  %s613_s3 = smov 2560  }
  0x3a   : > { %158 = sst [smem:[#allocation9]] %s613_s3  ;;  %s614_s4 = smov 1536  }
  0x3b   : > { %160 = sst [smem:[#allocation9 + $0x1]] %s614_s4  ;;  %s615_s7 = smov 512  }
  0x3c   : > { %162 = sst [smem:[#allocation9 + $0x2]] %s890_s14  ;;  %s616_s8 = smov 32  }
  0x3d   : > { %164 = sst [smem:[#allocation9 + $0x3]] %s615_s7  ;;  %s617_s17 = smov [#allocation8]  }
  0x3e   : > { %s429_s5 = sshll.u32 %s143_s27, 26  ;;  %166 = sst [smem:[#allocation9 + $0x4]] %s615_s7 }
  0x3f   : > { %s430_s6 = sadd.s32 134217728, %s429_s5  ;;  %168 = sst [smem:[#allocation9 + $0x5]] %s616_s8 }
  0x40   : > { %170 = dma.general (%p424_p2), %s136_s30, %s457_s16, %s152_s28, %s120_s24, %s617_s17, [#allocation9], %s430_s6, 0  }
  0x41 PF: > { %176 = sbr.rel (%p696_p13) target bundleno = 132 (0x84), region = 28 }
  0x48   : > { %585 = dma.done.wait (%p61_p4), [#allocation5], 16  }
  0x49   : > { %587 = vsyncadd (%p61_p4), [#allocation5], 4294967280  ;;  %s735_s14 = sand.u32 1, %s602_s10  }
  0x4a   : > { %s468_s25 = smul.u32 192, %s735_s14  ;;  %s183_s26 = scalar_lea.sflag [#allocation3], %s735_s14 }
  0x4c   : > { %s739_s16 = scalar_lea.vmem [#allocation6], %s468_s25 }
  0x4d   : > { %589 = dma.done.wait (%p681_p6), %s183_s26, 3072  }
  0x4e   : > { %591 = vsyncadd (%p681_p6), %s183_s26, 4294964224 }
  0x4f   : > { %191 = sfence }
  0x50   : > { %s220_s23 = sld [smem:[#allocation2]]  ;;  %s434_s24 = sld [smem:[#allocation2 + $0x1]]  ;;  %v223_v0 = vld [vmem:[%s739_s16] sm:$0xff]  ;;  %v224_v2 = vld [vmem:[%s739_s16 + $0x8] sm:$0xff]  ;;  %v225_v4 = vld [vmem:[%s739_s16 + $0x10] sm:$0xff] }
  0x51   : > { %s435_s27 = sld [smem:[#allocation2 + $0x2]]  ;;  %v436_v1 = vld [vmem:[%s739_s16 + $0x60] sm:$0xff]  ;;  %v437_v3 = vld [vmem:[%s739_s16 + $0x68] sm:$0xff]  ;;  %v438_v5 = vld [vmem:[%s739_s16 + $0x70] sm:$0xff]  ;;  %s469_s20 = smul.u32 96, %s735_s14 }
  0x52   : > { %v226_v6 = vld [vmem:[%s739_s16 + $0x18] sm:$0xff]  ;;  %v227_v9 = vld [vmem:[%s739_s16 + $0x20] sm:$0xff]  ;;  %v228_v15 = vld [vmem:[%s739_s16 + $0x28] sm:$0xff]  ;;  %s312_s19 = scalar_lea.sflag [#allocation4], %s735_s14  ;;  %s319_s29 = smul.u32 (%p688_p11), 3, %s657_s13 }
  0x53   : > { %v439_v8 = vld [vmem:[%s739_s16 + $0x78] sm:$0xff]  ;;  %v440_v10 = vld [vmem:[%s739_s16 + $0x80] sm:$0xff]  ;;  %v441_v20 = vld [vmem:[%s739_s16 + $0x88] sm:$0xff]  ;;  %s787_s28 = scalar_lea.vmem [#allocation7], %s469_s20 }
  0x54   : > { %v229_v21 = vld [vmem:[%s739_s16 + $0x30] sm:$0xff]  ;;  %v230_v31 = vld [vmem:[%s739_s16 + $0x38] sm:$0xff]  ;;  %v231_v37 = vld [vmem:[%s739_s16 + $0x40] sm:$0xff]  ;;  %s320_s30 = ssub.s32 (%p688_p11), 5, %s319_s29 }
  0x55   : > { %v442_v26 = vld [vmem:[%s739_s16 + $0x90] sm:$0xff]  ;;  %v443_v36 = vld [vmem:[%s739_s16 + $0x98] sm:$0xff]  ;;  %v444_v38 = vld [vmem:[%s739_s16 + $0xa0] sm:$0xff]  ;;  %p321_p4 = scmp.lt.s32.totalorder (%p688_p11), %s320_s30, 3 }
  0x56   : > { %v752_v7 = vstv %s220_s23  ;;  %v261_v12 = vstv %s434_s24  ;;  %v232_v43 = vld [vmem:[%s739_s16 + $0x48] sm:$0xff]  ;;  %v233_v45 = vld [vmem:[%s739_s16 + $0x50] sm:$0xff] }
  0x57   : > { %v236_v11 = vmul.f32 %v752_v7, %v223_v0  ;;  %v759_v13 = vstv %s435_s27  ;;  %v237_v14 = vmul.f32 %v752_v7, %v224_v2  ;;  %v262_v16 = vmul.f32 %v436_v1, %v261_v12  ;;  %v445_v44 = vld [vmem:[%s739_s16 + $0xa8] sm:$0xff]  ;;  %v446_v50 = vld [vmem:[%s739_s16 + $0xb0] sm:$0xff]  ;;  %v234_v55 = vld [vmem:[%s739_s16 + $0x58] sm:$0xff] }
  0x58   : > { %v263_v17 = vmul.f32 %v437_v3, %v261_v12  ;;  %v238_v18 = vmul.f32 %v752_v7, %v225_v4  ;;  %v264_v19 = vmul.f32 %v438_v5, %v261_v12  ;;  %v239_v22 = vmul.f32 %v752_v7, %v226_v6  ;;  %v447_v56 = vld [vmem:[%s739_s16 + $0xb8] sm:$0xff] }
  0x59   : > { %v265_v23 = vmul.f32 %v439_v8, %v261_v12  ;;  %v240_v24 = vmul.f32 %v752_v7, %v227_v9  ;;  %v266_v25 = vmul.f32 %v440_v10, %v261_v12  ;;  %v274_v27 = vadd.f32 %v262_v16, %v236_v11 }
  0x5a   : > { %v275_v28 = vadd.f32 %v263_v17, %v237_v14  ;;  %v276_v29 = vadd.f32 %v264_v19, %v238_v18  ;;  %v241_v30 = vmul.f32 %v752_v7, %v228_v15  ;;  %v267_v34 = vmul.f32 %v441_v20, %v261_v12 }
  0x5b   : > { %v277_v32 = vadd.f32 %v265_v23, %v239_v22  ;;  %v278_v33 = vadd.f32 %v266_v25, %v240_v24  ;;  %v242_v35 = vmul.f32 %v752_v7, %v229_v21  ;;  %v287_v39 = vadd.f32 %v759_v13, %v274_v27 }
  0x5c   : > { %v288_v40 = vadd.f32 %v759_v13, %v275_v28  ;;  %v289_v41 = vadd.f32 %v759_v13, %v276_v29  ;;  %v268_v42 = vmul.f32 %v442_v26, %v261_v12  ;;  %v279_v48 = vadd.f32 %v267_v34, %v241_v30 }
  0x5d   : > { %v290_v46 = vadd.f32 %v759_v13, %v277_v32  ;;  %v291_v47 = vadd.f32 %v759_v13, %v278_v33  ;;  %v243_v49 = vmul.f32 %v752_v7, %v230_v31  ;;  %299 = vst [vmem:[%s787_s28] sm:$0xff] %v287_v39  ;;  %v269_v52 = vmul.f32 %v443_v36, %v261_v12 }
  0x5e   : > { %300 = vst [vmem:[%s787_s28 + $0x8] sm:$0xff] %v288_v40  ;;  %301 = vst [vmem:[%s787_s28 + $0x10] sm:$0xff] %v289_v41  ;;  %v280_v51 = vadd.f32 %v268_v42, %v242_v35  ;;  %v244_v53 = vmul.f32 %v752_v7, %v231_v37  ;;  %v270_v54 = vmul.f32 %v444_v38, %v261_v12 }
  0x5f   : > { %302 = vst [vmem:[%s787_s28 + $0x18] sm:$0xff] %v290_v46  ;;  %303 = vst [vmem:[%s787_s28 + $0x20] sm:$0xff] %v291_v47  ;;  %v292_v57 = vadd.f32 %v759_v13, %v279_v48  ;;  %v245_v58 = vmul.f32 %v752_v7, %v232_v43  ;;  %v271_v59 = vmul.f32 %v445_v44, %v261_v12 }
  0x60   : > { %v246_v60 = vmul.f32 %v752_v7, %v233_v45  ;;  %v293_v61 = vadd.f32 %v759_v13, %v280_v51  ;;  %v281_v62 = vadd.f32 %v269_v52, %v243_v49  ;;  %v282_v63 = vadd.f32 %v270_v54, %v244_v53 }
  0x61   : > { %v272_v0 = vmul.f32 %v446_v50, %v261_v12  ;;  %304 = vst [vmem:[%s787_s28 + $0x28] sm:$0xff] %v292_v57  ;;  %v283_v1 = vadd.f32 %v271_v59, %v245_v58  ;;  %v247_v2 = vmul.f32 %v752_v7, %v234_v55  ;;  %v273_v3 = vmul.f32 %v447_v56, %v261_v12  ;;  %318 = sbr.rel (!%p688_p11) target bundleno = 132 (0x84), region = 40 }
  0x62   : > { %305 = vst [vmem:[%s787_s28 + $0x30] sm:$0xff] %v293_v61  ;;  %v294_v4 = vadd.f32 %v759_v13, %v281_v62  ;;  %v295_v5 = vadd.f32 %v759_v13, %v282_v63 }
  0x63   : > { %v284_v6 = vadd.f32 %v272_v0, %v246_v60  ;;  %v296_v8 = vadd.f32 %v759_v13, %v283_v1  ;;  %v285_v9 = vadd.f32 %v273_v3, %v247_v2 }
  0x64   : > { %306 = vst [vmem:[%s787_s28 + $0x38] sm:$0xff] %v294_v4  ;;  %307 = vst [vmem:[%s787_s28 + $0x40] sm:$0xff] %v295_v5 }
  0x65   : > { %v297_v10 = vadd.f32 %v759_v13, %v284_v6  ;;  %308 = vst [vmem:[%s787_s28 + $0x48] sm:$0xff] %v296_v8  ;;  %v298_v11 = vadd.f32 %v759_v13, %v285_v9 }
  0x67   : > { %309 = vst [vmem:[%s787_s28 + $0x50] sm:$0xff] %v297_v10  ;;  %310 = vst [vmem:[%s787_s28 + $0x58] sm:$0xff] %v298_v11 }
  0x68   : > { %s892_s30 = smov (!%p321_p4, %s320_s30), 3 }
  0x69   : > { %s818_s3 = sshll.u32 %s892_s30, 9 }
  0x6a   : > { %s326_s4 = ssub.s32 1536, %s818_s3 }
  0x6b   : > { %327 = vsyncadd %s312_s19, %s326_s4  ;;  %p450_p5 = scmp.ne.s32.totalorder %s818_s3, 0  ;;  %s466_s21 = smul.u32 1536, %s657_s13 }
  0x6c   : > { %s333_s5 = sshll.u32 %s787_s28, 4  ;;  %s618_s25 = smov [#allocation7]   ;;  %s831_s5 = int_to_ptr.vmem [resolvable:$true] %s333_s5 }
  0x6d   : > { %s829_s8 = scalar_lea.hbm %s879_s2, %s466_s21  ;;  %s540_s17 = scalar_lea.vmem %s831_s5, %s818_s3 }
  0x6e   : > { %p541_p6 = scmp.ne.s32.totalorder %s831_s5, %s540_s17  ;;  %s544_s26 = sshll.u32 %s618_s25, 4  ;;  %s545_s26 = int_to_ptr.vmem [resolvable:$false] %s544_s26 }
  0x6f   : > { %s546_s13 = scalar_lea.vmem %s545_s26, 3072  ;;  %p547_p3 = scmp.lt.s32.totalorder %s831_s5, %s545_s26 }
  0x70   : > { %p542_p11 = pnand %p541_p6, %p450_p5  ;;  %p548_p7 = scmp.lt.s32.totalorder %s546_s13, %s540_s17 }
  0x72   : > { %p543_p13 = pneg %p542_p11  ;;  %p549_p8 = por %p548_p7, %p547_p3 }
  0x74   : > { %p550_p9 = pnand %p549_p8, %p543_p13 }
  0x76   : > { %553 = shalt.err (!%p550_p9)
}
  0x77   : > { %s554_s16 = scalar_lea.hbm %s829_s8, %s818_s3  ;;  %s558_s27 = scalar_lea.hbm %s879_s2, 2560 }
  0x78   : > { %p555_p10 = scmp.ne.s32.totalorder %s829_s8, %s554_s16  ;;  %p559_p4 = scmp.lt.u32.totalorder %s829_s8, %s879_s2 }
  0x79   : > { %p560_p6 = scmp.lt.u32.totalorder %s558_s27, %s554_s16  ;;  %p562_p13 = scmp.lt.u32.totalorder %s554_s16, %s829_s8 }
  0x7a   : > { %p556_p0 = pnand %p555_p10, %p450_p5 }
  0x7b   : > { %p561_p11 = por %p560_p6, %p559_p4 }
  0x7c   : > { %p557_p2 = pneg %p556_p0 }
  0x7d   : > { %p563_p3 = por %p562_p13, %p561_p11 }
  0x7f   : > { %p564_p7 = pnand %p563_p3, %p557_p2 }
  0x81   : > { %567 = shalt.err (!%p564_p7)
}
  0x82   : > { %s619_s29 = smov 512   ;;  %s620_s30 = smov 32  }
  0x83   : > { %339 = dma.vmem_to_hbm [thread:$0]  (%p450_p5), %s831_s5, %s818_s3, %s829_s8, %s312_s19, %s619_s29, %s619_s29, %s620_s30  }
  0x84 PF: > { %s348_s4 = sand.u32 1, %s598_s9   ;;  %p481_p8 = pnand %p421_p1, %p692_p12 }
  0x85   : > { %s349_s21 = scalar_lea.sflag [#allocation4], %s348_s4 }
  0x86   : > { %593 = dma.done.wait (!%p481_p8), %s349_s21, 1536  }
  0x87   : > { %595 = vsyncadd (!%p481_p8), %s349_s21, 4294965760  ;;  %p16_p9 = scmp.ge.s32.totalorder %s661_s15, 4   ;;  %s885_s9 = smov %s602_s10 }
  0x88   : > { %s886_s10 = smov %s606_s11  ;;  %s887_s11 = smov %s673_s18 }
  0x89   : > { %s888_s12 = smov %s661_s15  ;;  %18 = sbr.rel (!%p16_p9) target bundleno = 6 (0x6), region = 84 }
  0x90   :  { %354 = vsyncpa [#allocation3], 1 }
  0x91   :  { %356 = vsyncpa [#allocation3 + $0x1], 1 }
  0x92   :  { %357 = vsyncpa [#allocation4], 1 }
  0x93   :  { %359 = vsyncpa [#allocation4 + $0x1], 1 }
  0x94   :  { %360 = vsyncpa [#allocation5], 1 }
  0x95   :  { %362 = vsyncpa [#allocation5 + $0x1], 1 }

</bundles_post_ra>
